<compile_context>
chip_gen: v7x
topology: tpu7x:2x2x1
jax: 0.10.0
libtpu: 0.0.40
codegen_flags: <defaults>
</compile_context>

<pallas_src>
import functools

import numpy as np

import jax
import jax.numpy as jnp
from jax.experimental import pallas as pl
from jax.experimental.pallas import tpu as pltpu


def _conv_taps(x, w_ref, m_ref, *, K, W, HW, pad):
    """Depthwise conv taps as lane rolls + edge masks.

    x     : (R, HW) f32 value; rows = n*C + c, lanes = flattened H*W
    w_ref : (R, K*K) per-row (per-channel) tap weights
    m_ref : (K*K, HW) 0/1 edge masks implementing the conv zero padding
    """
    acc = jnp.zeros(x.shape, jnp.float32)
    for kh in range(K):
        for kw in range(K):
            t = kh * K + kw
            d = (kh - pad) * W + (kw - pad)
            # want shifted[p] = x[p + d] (circular); wrap-around and
            # out-of-image taps are zeroed by the precomputed edge mask.
            shifted = x if d == 0 else pltpu.roll(x, shift=(-d) % HW, axis=1)
            if not (kh == pad and kw == pad):        # center-tap mask is all-ones
                shifted = shifted * m_ref[t:t + 1, :]
            acc = acc + shifted * w_ref[:, t:t + 1]
    return acc


def _fused_dw_bn_hswish_kernel(x_ref, w_ref, m_ref, g_ref, b_ref, o_ref,
                               *, N, C, K, W, HW, pad, eps, inv_count):
    """Single-launch fused path: conv -> BN batch stats -> affine -> Hardswish."""
    x = x_ref[...].astype(jnp.float32)                       # (N*C, HW)
    acc = _conv_taps(x, w_ref, m_ref, K=K, W=W, HW=HW, pad=pad)

    # BatchNorm2d training-mode stats: per channel over (N, H, W).
    row_sum = jnp.sum(acc, axis=1, keepdims=True)            # (N*C, 1)
    row_sq = jnp.sum(acc * acc, axis=1, keepdims=True)       # (N*C, 1)
    ch_sum = row_sum[0:C]
    ch_sq = row_sq[0:C]
    for n in range(1, N):                                    # tiny, unrolled
        ch_sum = ch_sum + row_sum[n * C:(n + 1) * C]
        ch_sq = ch_sq + row_sq[n * C:(n + 1) * C]
    mean = ch_sum * inv_count                                # (C, 1)
    var = jnp.maximum(ch_sq * inv_count - mean * mean, 0.0)  # biased variance
    inv = jax.lax.rsqrt(var + eps)
    scale = g_ref[...] * inv                                 # (C, 1)
    shift = b_ref[...] - mean * scale                        # (C, 1)
    if N > 1:                                                # broadcast to rows
        scale = jnp.concatenate([scale] * N, axis=0)         # (N*C, 1)
        shift = jnp.concatenate([shift] * N, axis=0)

    y = acc * scale + shift
    o_ref[...] = (y * jnp.clip(y + 3.0, 0.0, 6.0) * (1.0 / 6.0)).astype(o_ref.dtype)


def _dwconv_rows_kernel(x_ref, w_ref, m_ref, conv_ref, rsum_ref, rsq_ref,
                        *, K, W, HW, pad):
    """Tiled pass 1: depthwise conv + fused per-row sum / sum-of-squares."""
    x = x_ref[...].astype(jnp.float32)
    acc = _conv_taps(x, w_ref, m_ref, K=K, W=W, HW=HW, pad=pad)
    conv_ref[...] = acc
    rsum_ref[...] = jnp.sum(acc, axis=1, keepdims=True)
    rsq_ref[...] = jnp.sum(acc * acc, axis=1, keepdims=True)


def _bn_hswish_kernel(conv_ref, scale_ref, shift_ref, o_ref):
    """Tiled pass 2: per-row affine (folded BatchNorm) + Hardswish."""
    y = conv_ref[...] * scale_ref[...] + shift_ref[...]
    o_ref[...] = (y * jnp.clip(y + 3.0, 0.0, 6.0) * (1.0 / 6.0)).astype(o_ref.dtype)


def _edge_masks(H, W, K, pad):
    """(K*K, H*W) 0/1 masks: mask[t, p] = 1 iff tap t at flat position p reads
    an in-bounds input pixel (zero padding in flattened space, also killing the
    circular-roll wrap-around)."""
    p = np.arange(H * W)
    hh, ww = p // W, p % W
    rows = []
    for kh in range(K):
        for kw in range(K):
            dh, dw = kh - pad, kw - pad
            rows.append(((hh + dh >= 0) & (hh + dh < H) &
                         (ww + dw >= 0) & (ww + dw < W)).astype(np.float32))
    return jnp.asarray(np.stack(rows))


def _pick_tile_rows(nc, hw, itemsize):
    # Per grid step we hold ~ (input block + f32 conv block) x double buffering.
    # Stay well under the v7x scoped-VMEM default so the same tiling works on
    # 64 MiB parts; cap the tile so big problems still get multiple grid steps.
    budget = 16 * 1024 * 1024
    per_row = hw * (itemsize + 4) * 2
    max_rows = max(8, (budget // max(per_row, 1)) // 8 * 8)
    if nc <= 8:
        return nc
    return int(max(8, min(max_rows, 512, (nc // 8) * 8)))


def depthwise_conv_bn_hswish(x_nchw, w_oihw, gamma, beta,
                             *, stride=1, padding=1, eps=1e-5):
    """DepthwiseConv forward: depthwise Conv2d (bias=False) -> BatchNorm2d
    (training-mode batch statistics) -> Hardswish. PyTorch NCHW / (C,1,K,K)."""
    N, C, H, W = x_nchw.shape
    K = w_oihw.shape[-1]
    if stride != 1 or 2 * padding != K - 1:
        # TODO(synk): stride>1 / non-'same' depthwise configs need gather-style
        # tap indexing; the roll-based lane-dense path assumes stride=1 'same'.
        raise NotImplementedError("only stride=1 with 2*padding == K-1 supported")
    NC, HW, KK = N * C, H * W, K * K
    out_dtype = x_nchw.dtype
    itemsize = out_dtype.itemsize

    # Free, layout-only reshapes (no transpose / pad / extra HBM round trips).
    x2d = x_nchw.reshape(NC, HW)
    w_rows = jnp.tile(w_oihw.reshape(C, KK), (N, 1)).astype(jnp.float32)  # (NC,KK)
    masks = _edge_masks(H, W, K, padding)                                 # (KK,HW)
    inv_count = 1.0 / float(N * H * W)

    # ---- fused single-launch path: everything resident in VMEM ----------------
    fused_bytes = NC * HW * (2 * itemsize + 4) + KK * HW * 4
    if fused_bytes <= 10 * 1024 * 1024 and N <= 32:
        vmem_limit = int(min(48 * 1024 * 1024,
                             max(8 * 1024 * 1024, 3 * fused_bytes)))
        out2d = pl.pallas_call(
            functools.partial(_fused_dw_bn_hswish_kernel, N=N, C=C, K=K, W=W,
                              HW=HW, pad=padding, eps=eps, inv_count=inv_count),
            grid=(1,),
            in_specs=[
                pl.BlockSpec((NC, HW), lambda i: (0, 0)),
                pl.BlockSpec((NC, KK), lambda i: (0, 0)),
                pl.BlockSpec((KK, HW), lambda i: (0, 0)),
                pl.BlockSpec((C, 1), lambda i: (0, 0)),
                pl.BlockSpec((C, 1), lambda i: (0, 0)),
            ],
            out_specs=pl.BlockSpec((NC, HW), lambda i: (0, 0)),
            out_shape=jax.ShapeDtypeStruct((NC, HW), out_dtype),
            compiler_params=pltpu.CompilerParams(
                dimension_semantics=("arbitrary",),
                vmem_limit_bytes=vmem_limit),
            cost_estimate=pl.CostEstimate(
                flops=2 * NC * HW * KK + 12 * NC * HW,
                transcendentals=C,
                bytes_accessed=NC * HW * 2 * itemsize + NC * KK * 4
                + KK * HW * 4 + 2 * C * 4),
        )(x2d, w_rows, masks,
          gamma.astype(jnp.float32).reshape(C, 1),
          beta.astype(jnp.float32).reshape(C, 1))
        return out2d.reshape(N, C, H, W)

    # ---- tiled two-pass fallback for problems that do not fit in VMEM ---------
    tile_rows = _pick_tile_rows(NC, HW, itemsize)
    grid = (pl.cdiv(NC, tile_rows),)
    vmem_limit = int(min(32 * 1024 * 1024,
                         max(4 * 1024 * 1024, 8 * tile_rows * HW * 4)))
    cparams = pltpu.CompilerParams(dimension_semantics=("parallel",),
                                   vmem_limit_bytes=vmem_limit)

    # pass 1: depthwise conv + fused per-row sum / sumsq
    conv_f32, row_sum, row_sq = pl.pallas_call(
        functools.partial(_dwconv_rows_kernel, K=K, W=W, HW=HW, pad=padding),
        grid=grid,
        in_specs=[
            pl.BlockSpec((tile_rows, HW), lambda i: (i, 0)),
            pl.BlockSpec((tile_rows, KK), lambda i: (i, 0)),
            pl.BlockSpec((KK, HW), lambda i: (0, 0)),
        ],
        out_specs=(
            pl.BlockSpec((tile_rows, HW), lambda i: (i, 0)),
            pl.BlockSpec((tile_rows, 1), lambda i: (i, 0)),
            pl.BlockSpec((tile_rows, 1), lambda i: (i, 0)),
        ),
        out_shape=(
            jax.ShapeDtypeStruct((NC, HW), jnp.float32),
            jax.ShapeDtypeStruct((NC, 1), jnp.float32),
            jax.ShapeDtypeStruct((NC, 1), jnp.float32),
        ),
        compiler_params=cparams,
        cost_estimate=pl.CostEstimate(
            flops=2 * NC * HW * KK + 4 * NC * HW,
            transcendentals=0,
            bytes_accessed=NC * HW * (itemsize + 4) + NC * KK * 4 + KK * HW * 4),
    )(x2d, w_rows, masks)

    # BatchNorm batch stats over the full (N, H, W) extent, per channel (tiny).
    count = float(N * H * W)
    ch_sum = row_sum.reshape(N, C).sum(axis=0)
    ch_sq = row_sq.reshape(N, C).sum(axis=0)
    mean = ch_sum / count
    var = jnp.maximum(ch_sq / count - mean * mean, 0.0)
    inv = jax.lax.rsqrt(var + eps)
    scale = gamma.astype(jnp.float32) * inv
    shift = beta.astype(jnp.float32) - mean * scale
    scale_rows = jnp.tile(scale, N).reshape(NC, 1)
    shift_rows = jnp.tile(shift, N).reshape(NC, 1)

    # pass 2: folded BN affine + Hardswish (elementwise, lane-dense)
    out2d = pl.pallas_call(
        _bn_hswish_kernel,
        grid=grid,
        in_specs=[
            pl.BlockSpec((tile_rows, HW), lambda i: (i, 0)),
            pl.BlockSpec((tile_rows, 1), lambda i: (i, 0)),
            pl.BlockSpec((tile_rows, 1), lambda i: (i, 0)),
        ],
        out_specs=pl.BlockSpec((tile_rows, HW), lambda i: (i, 0)),
        out_shape=jax.ShapeDtypeStruct((NC, HW), out_dtype),
        compiler_params=cparams,
        cost_estimate=pl.CostEstimate(
            flops=6 * NC * HW,
            transcendentals=0,
            bytes_accessed=NC * HW * (4 + itemsize)),
    )(conv_f32, scale_rows, shift_rows)

    return out2d.reshape(N, C, H, W)


def _reference(x_nchw, w_oihw, gamma, beta, *, stride, padding, eps):
    C = x_nchw.shape[1]
    conv = jax.lax.conv_general_dilated(
        x_nchw, w_oihw, window_strides=(stride, stride),
        padding=((padding, padding), (padding, padding)),
        feature_group_count=C,
        dimension_numbers=("NCHW", "OIHW", "NCHW"))
    mean = conv.mean(axis=(0, 2, 3), keepdims=True)
    var = ((conv - mean) ** 2).mean(axis=(0, 2, 3), keepdims=True)
    y = (conv - mean) / jnp.sqrt(var + eps)
    y = y * gamma.reshape(1, C, 1, 1) + beta.reshape(1, C, 1, 1)
    return y * jnp.clip(y + 3.0, 0.0, 6.0) / 6.0


if __name__ == "__main__":
    key = jax.random.PRNGKey(0)
    k_x, k_w = jax.random.split(key)

    # Module config: DepthwiseConv(in_channels=4, kernel_size=3, stride=1, padding=1)
    N, C, H, W = 2, 4, 16, 16
    K, stride, padding = 3, 1, 1

    x = jax.random.normal(k_x, (N, C, H, W), dtype=jnp.float32)
    # depthwise weight: (C, 1, K, K), bias=False
    w = jax.random.normal(k_w, (C, 1, K, K), dtype=jnp.float32) * 0.1
    # BatchNorm2d default init: weight=1, bias=0
    gamma = jnp.ones((C,), jnp.float32)
    beta = jnp.zeros((C,), jnp.float32)

    fn = jax.jit(functools.partial(depthwise_conv_bn_hswish,
                                   stride=stride, padding=padding))
    out = jax.block_until_ready(fn(x, w, gamma, beta))

    ref = _reference(x, w, gamma, beta, stride=stride, padding=padding, eps=1e-5)
    assert out.shape == (N, C, H, W), out.shape
    assert jnp.allclose(out, ref, atol=1e-4, rtol=1e-4), "mismatch vs reference"

    print("KERNEL_OK")
</pallas_src>

<mosaic_0001>
module attributes {stable_mosaic.version = 11 : i64} {
  func.func @_fused_dw_bn_hswish_kernel(%arg0: i32, %arg1: memref<8x256xf32, #tpu.memory_space<vmem>>, %arg2: memref<8x9xf32, #tpu.memory_space<vmem>>, %arg3: memref<9x256xf32, #tpu.memory_space<vmem>>, %arg4: memref<4x1xf32, #tpu.memory_space<vmem>>, %arg5: memref<4x1xf32, #tpu.memory_space<vmem>>, %arg6: memref<8x256xf32, #tpu.memory_space<vmem>>) attributes {dimension_semantics = [#tpu.dimension_semantics<arbitrary>], iteration_bounds = array<i64: 1>, scalar_prefetch = 0 : i64, scratch_operands = 0 : i64, tpu.core_type = #tpu.core_type<tc>, window_params = [{pipeline_mode = #tpu.pipeline_mode<synchronous>, transform_indices = @transform_0, window_bounds = array<i64: 8, 256>}, {pipeline_mode = #tpu.pipeline_mode<synchronous>, transform_indices = @transform_1, window_bounds = array<i64: 8, 9>}, {pipeline_mode = #tpu.pipeline_mode<synchronous>, transform_indices = @transform_2, window_bounds = array<i64: 9, 256>}, {pipeline_mode = #tpu.pipeline_mode<synchronous>, transform_indices = @transform_3, window_bounds = array<i64: 4, 1>}, {pipeline_mode = #tpu.pipeline_mode<synchronous>, transform_indices = @transform_4, window_bounds = array<i64: 4, 1>}, {pipeline_mode = #tpu.pipeline_mode<synchronous>, transform_indices = @transform_5, window_bounds = array<i64: 8, 256>}]} {
    %c0 = arith.constant 0 : index
    %c0_0 = arith.constant 0 : index
    %0 = vector.load %arg1[%c0, %c0_0] : memref<8x256xf32, #tpu.memory_space<vmem>>, vector<8x256xf32>
    %cst = arith.constant 0.000000e+00 : f32
    %1 = vector.broadcast %cst : f32 to vector<8x256xf32>
    %c17_i32 = arith.constant 17 : i32
    %2 = tpu.dynamic_rotate %0 by %c17_i32 dim 1 : vector<8x256xf32>, i32 -> vector<8x256xf32>
    %c0_1 = arith.constant 0 : index
    %c0_2 = arith.constant 0 : index
    %3 = vector.load %arg3[%c0_1, %c0_2] : memref<9x256xf32, #tpu.memory_space<vmem>>, vector<1x256xf32>
    %4 = vector.broadcast %3 : vector<1x256xf32> to vector<8x256xf32>
    %5 = arith.mulf %2, %4 : vector<8x256xf32>
    %c0_3 = arith.constant 0 : index
    %c0_4 = arith.constant 0 : index
    %6 = vector.load %arg2[%c0_3, %c0_4] : memref<8x9xf32, #tpu.memory_space<vmem>>, vector<8x1xf32>
    %7 = vector.broadcast %6 : vector<8x1xf32> to vector<8x256xf32>
    %8 = arith.mulf %5, %7 : vector<8x256xf32>
    %9 = arith.addf %1, %8 : vector<8x256xf32>
    %c16_i32 = arith.constant 16 : i32
    %10 = tpu.dynamic_rotate %0 by %c16_i32 dim 1 : vector<8x256xf32>, i32 -> vector<8x256xf32>
    %c1 = arith.constant 1 : index
    %c0_5 = arith.constant 0 : index
    %11 = vector.load %arg3[%c1, %c0_5] : memref<9x256xf32, #tpu.memory_space<vmem>>, vector<1x256xf32>
    %12 = vector.broadcast %11 : vector<1x256xf32> to vector<8x256xf32>
    %13 = arith.mulf %10, %12 : vector<8x256xf32>
    %c0_6 = arith.constant 0 : index
    %c1_7 = arith.constant 1 : index
    %14 = vector.load %arg2[%c0_6, %c1_7] : memref<8x9xf32, #tpu.memory_space<vmem>>, vector<8x1xf32>
    %15 = vector.broadcast %14 : vector<8x1xf32> to vector<8x256xf32>
    %16 = arith.mulf %13, %15 : vector<8x256xf32>
    %17 = arith.addf %9, %16 : vector<8x256xf32>
    %c15_i32 = arith.constant 15 : i32
    %18 = tpu.dynamic_rotate %0 by %c15_i32 dim 1 : vector<8x256xf32>, i32 -> vector<8x256xf32>
    %c2 = arith.constant 2 : index
    %c0_8 = arith.constant 0 : index
    %19 = vector.load %arg3[%c2, %c0_8] : memref<9x256xf32, #tpu.memory_space<vmem>>, vector<1x256xf32>
    %20 = vector.broadcast %19 : vector<1x256xf32> to vector<8x256xf32>
    %21 = arith.mulf %18, %20 : vector<8x256xf32>
    %c0_9 = arith.constant 0 : index
    %c2_10 = arith.constant 2 : index
    %22 = vector.load %arg2[%c0_9, %c2_10] : memref<8x9xf32, #tpu.memory_space<vmem>>, vector<8x1xf32>
    %23 = vector.broadcast %22 : vector<8x1xf32> to vector<8x256xf32>
    %24 = arith.mulf %21, %23 : vector<8x256xf32>
    %25 = arith.addf %17, %24 : vector<8x256xf32>
    %c1_i32 = arith.constant 1 : i32
    %26 = tpu.dynamic_rotate %0 by %c1_i32 dim 1 : vector<8x256xf32>, i32 -> vector<8x256xf32>
    %c3 = arith.constant 3 : index
    %c0_11 = arith.constant 0 : index
    %27 = vector.load %arg3[%c3, %c0_11] : memref<9x256xf32, #tpu.memory_space<vmem>>, vector<1x256xf32>
    %28 = vector.broadcast %27 : vector<1x256xf32> to vector<8x256xf32>
    %29 = arith.mulf %26, %28 : vector<8x256xf32>
    %c0_12 = arith.constant 0 : index
    %c3_13 = arith.constant 3 : index
    %30 = vector.load %arg2[%c0_12, %c3_13] : memref<8x9xf32, #tpu.memory_space<vmem>>, vector<8x1xf32>
    %31 = vector.broadcast %30 : vector<8x1xf32> to vector<8x256xf32>
    %32 = arith.mulf %29, %31 : vector<8x256xf32>
    %33 = arith.addf %25, %32 : vector<8x256xf32>
    %c0_14 = arith.constant 0 : index
    %c4 = arith.constant 4 : index
    %34 = vector.load %arg2[%c0_14, %c4] : memref<8x9xf32, #tpu.memory_space<vmem>>, vector<8x1xf32>
    %35 = vector.broadcast %34 : vector<8x1xf32> to vector<8x256xf32>
    %36 = arith.mulf %0, %35 : vector<8x256xf32>
    %37 = arith.addf %33, %36 : vector<8x256xf32>
    %c255_i32 = arith.constant 255 : i32
    %38 = tpu.dynamic_rotate %0 by %c255_i32 dim 1 : vector<8x256xf32>, i32 -> vector<8x256xf32>
    %c5 = arith.constant 5 : index
    %c0_15 = arith.constant 0 : index
    %39 = vector.load %arg3[%c5, %c0_15] : memref<9x256xf32, #tpu.memory_space<vmem>>, vector<1x256xf32>
    %40 = vector.broadcast %39 : vector<1x256xf32> to vector<8x256xf32>
    %41 = arith.mulf %38, %40 : vector<8x256xf32>
    %c0_16 = arith.constant 0 : index
    %c5_17 = arith.constant 5 : index
    %42 = vector.load %arg2[%c0_16, %c5_17] : memref<8x9xf32, #tpu.memory_space<vmem>>, vector<8x1xf32>
    %43 = vector.broadcast %42 : vector<8x1xf32> to vector<8x256xf32>
    %44 = arith.mulf %41, %43 : vector<8x256xf32>
    %45 = arith.addf %37, %44 : vector<8x256xf32>
    %c241_i32 = arith.constant 241 : i32
    %46 = tpu.dynamic_rotate %0 by %c241_i32 dim 1 : vector<8x256xf32>, i32 -> vector<8x256xf32>
    %c6 = arith.constant 6 : index
    %c0_18 = arith.constant 0 : index
    %47 = vector.load %arg3[%c6, %c0_18] : memref<9x256xf32, #tpu.memory_space<vmem>>, vector<1x256xf32>
    %48 = vector.broadcast %47 : vector<1x256xf32> to vector<8x256xf32>
    %49 = arith.mulf %46, %48 : vector<8x256xf32>
    %c0_19 = arith.constant 0 : index
    %c6_20 = arith.constant 6 : index
    %50 = vector.load %arg2[%c0_19, %c6_20] : memref<8x9xf32, #tpu.memory_space<vmem>>, vector<8x1xf32>
    %51 = vector.broadcast %50 : vector<8x1xf32> to vector<8x256xf32>
    %52 = arith.mulf %49, %51 : vector<8x256xf32>
    %53 = arith.addf %45, %52 : vector<8x256xf32>
    %c240_i32 = arith.constant 240 : i32
    %54 = tpu.dynamic_rotate %0 by %c240_i32 dim 1 : vector<8x256xf32>, i32 -> vector<8x256xf32>
    %c7 = arith.constant 7 : index
    %c0_21 = arith.constant 0 : index
    %55 = vector.load %arg3[%c7, %c0_21] : memref<9x256xf32, #tpu.memory_space<vmem>>, vector<1x256xf32>
    %56 = vector.broadcast %55 : vector<1x256xf32> to vector<8x256xf32>
    %57 = arith.mulf %54, %56 : vector<8x256xf32>
    %c0_22 = arith.constant 0 : index
    %c7_23 = arith.constant 7 : index
    %58 = vector.load %arg2[%c0_22, %c7_23] : memref<8x9xf32, #tpu.memory_space<vmem>>, vector<8x1xf32>
    %59 = vector.broadcast %58 : vector<8x1xf32> to vector<8x256xf32>
    %60 = arith.mulf %57, %59 : vector<8x256xf32>
    %61 = arith.addf %53, %60 : vector<8x256xf32>
    %c239_i32 = arith.constant 239 : i32
    %62 = tpu.dynamic_rotate %0 by %c239_i32 dim 1 : vector<8x256xf32>, i32 -> vector<8x256xf32>
    %c8 = arith.constant 8 : index
    %c0_24 = arith.constant 0 : index
    %63 = vector.load %arg3[%c8, %c0_24] : memref<9x256xf32, #tpu.memory_space<vmem>>, vector<1x256xf32>
    %64 = vector.broadcast %63 : vector<1x256xf32> to vector<8x256xf32>
    %65 = arith.mulf %62, %64 : vector<8x256xf32>
    %c0_25 = arith.constant 0 : index
    %c8_26 = arith.constant 8 : index
    %66 = vector.load %arg2[%c0_25, %c8_26] : memref<8x9xf32, #tpu.memory_space<vmem>>, vector<8x1xf32>
    %67 = vector.broadcast %66 : vector<8x1xf32> to vector<8x256xf32>
    %68 = arith.mulf %65, %67 : vector<8x256xf32>
    %69 = arith.addf %61, %68 : vector<8x256xf32>
    %cst_27 = arith.constant dense<0.000000e+00> : vector<8xf32>
    %70 = vector.multi_reduction <add>, %69, %cst_27 [1] : vector<8x256xf32> to vector<8xf32>
    %71 = vector.shape_cast %70 : vector<8xf32> to vector<8x1xf32>
    %72 = arith.mulf %69, %69 : vector<8x256xf32>
    %cst_28 = arith.constant dense<0.000000e+00> : vector<8xf32>
    %73 = vector.multi_reduction <add>, %72, %cst_28 [1] : vector<8x256xf32> to vector<8xf32>
    %74 = vector.shape_cast %73 : vector<8xf32> to vector<8x1xf32>
    %75 = vector.extract_strided_slice %71 {offsets = [0, 0], sizes = [4, 1], strides = [1, 1]} : vector<8x1xf32> to vector<4x1xf32>
    %76 = vector.extract_strided_slice %74 {offsets = [0, 0], sizes = [4, 1], strides = [1, 1]} : vector<8x1xf32> to vector<4x1xf32>
    %77 = vector.extract_strided_slice %71 {offsets = [4, 0], sizes = [4, 1], strides = [1, 1]} : vector<8x1xf32> to vector<4x1xf32>
    %78 = arith.addf %75, %77 : vector<4x1xf32>
    %79 = vector.extract_strided_slice %74 {offsets = [4, 0], sizes = [4, 1], strides = [1, 1]} : vector<8x1xf32> to vector<4x1xf32>
    %80 = arith.addf %76, %79 : vector<4x1xf32>
    %cst_29 = arith.constant 0.001953125 : f32
    %81 = vector.broadcast %cst_29 : f32 to vector<4x1xf32>
    %82 = arith.mulf %78, %81 : vector<4x1xf32>
    %cst_30 = arith.constant 0.001953125 : f32
    %83 = vector.broadcast %cst_30 : f32 to vector<4x1xf32>
    %84 = arith.mulf %80, %83 : vector<4x1xf32>
    %85 = arith.mulf %82, %82 : vector<4x1xf32>
    %86 = arith.subf %84, %85 : vector<4x1xf32>
    %cst_31 = arith.constant 0.000000e+00 : f32
    %87 = vector.broadcast %cst_31 : f32 to vector<4x1xf32>
    %88 = arith.maximumf %86, %87 : vector<4x1xf32>
    %cst_32 = arith.constant 9.99999974E-6 : f32
    %89 = vector.broadcast %cst_32 : f32 to vector<4x1xf32>
    %90 = arith.addf %88, %89 : vector<4x1xf32>
    %91 = math.rsqrt %90 : vector<4x1xf32>
    %c0_33 = arith.constant 0 : index
    %c0_34 = arith.constant 0 : index
    %92 = vector.load %arg4[%c0_33, %c0_34] : memref<4x1xf32, #tpu.memory_space<vmem>>, vector<4x1xf32>
    %93 = arith.mulf %92, %91 : vector<4x1xf32>
    %c0_35 = arith.constant 0 : index
    %c0_36 = arith.constant 0 : index
    %94 = vector.load %arg5[%c0_35, %c0_36] : memref<4x1xf32, #tpu.memory_space<vmem>>, vector<4x1xf32>
    %95 = arith.mulf %82, %93 : vector<4x1xf32>
    %96 = arith.subf %94, %95 : vector<4x1xf32>
    %97 = tpu.concatenate %93, %93 in 0 : vector<4x1xf32>, vector<4x1xf32> -> vector<8x1xf32>
    %98 = tpu.concatenate %96, %96 in 0 : vector<4x1xf32>, vector<4x1xf32> -> vector<8x1xf32>
    %99 = vector.broadcast %97 : vector<8x1xf32> to vector<8x256xf32>
    %100 = arith.mulf %69, %99 : vector<8x256xf32>
    %101 = vector.broadcast %98 : vector<8x1xf32> to vector<8x256xf32>
    %102 = arith.addf %100, %101 : vector<8x256xf32>
    %cst_37 = arith.constant 3.000000e+00 : f32
    %103 = vector.broadcast %cst_37 : f32 to vector<8x256xf32>
    %104 = arith.addf %102, %103 : vector<8x256xf32>
    %cst_38 = arith.constant 0.000000e+00 : f32
    %cst_39 = arith.constant 6.000000e+00 : f32
    %105 = vector.broadcast %cst_38 : f32 to vector<8x256xf32>
    %106 = arith.maximumf %105, %104 : vector<8x256xf32>
    %107 = vector.broadcast %cst_39 : f32 to vector<8x256xf32>
    %108 = arith.minimumf %107, %106 : vector<8x256xf32>
    %109 = arith.mulf %102, %108 : vector<8x256xf32>
    %cst_40 = arith.constant 0.166666672 : f32
    %110 = vector.broadcast %cst_40 : f32 to vector<8x256xf32>
    %111 = arith.mulf %109, %110 : vector<8x256xf32>
    %c0_41 = arith.constant 0 : index
    %c0_42 = arith.constant 0 : index
    %112 = vector.load %arg6[%c0_41, %c0_42] : memref<8x256xf32, #tpu.memory_space<vmem>>, vector<8x256xf32>
    tpu.vector_store %arg6[%c0_41, %c0_42], %111 {strides = array<i32>} : memref<8x256xf32, #tpu.memory_space<vmem>>, vector<8x256xf32>,
    return
  }
  func.func @transform_0(%arg0: i32) -> (i32, i32) {
    %c0_i32 = arith.constant 0 : i32
    %c0_i32_0 = arith.constant 0 : i32
    %c0_i32_1 = arith.constant 0 : i32
    return %c0_i32, %c0_i32_0 : i32, i32
  }
  func.func @transform_1(%arg0: i32) -> (i32, i32) {
    %c0_i32 = arith.constant 0 : i32
    %c0_i32_0 = arith.constant 0 : i32
    %c0_i32_1 = arith.constant 0 : i32
    return %c0_i32, %c0_i32_0 : i32, i32
  }
  func.func @transform_2(%arg0: i32) -> (i32, i32) {
    %c0_i32 = arith.constant 0 : i32
    %c0_i32_0 = arith.constant 0 : i32
    %c0_i32_1 = arith.constant 0 : i32
    return %c0_i32, %c0_i32_0 : i32, i32
  }
  func.func @transform_3(%arg0: i32) -> (i32, i32) {
    %c0_i32 = arith.constant 0 : i32
    %c0_i32_0 = arith.constant 0 : i32
    %c0_i32_1 = arith.constant 0 : i32
    return %c0_i32, %c0_i32_0 : i32, i32
  }
  func.func @transform_4(%arg0: i32) -> (i32, i32) {
    %c0_i32 = arith.constant 0 : i32
    %c0_i32_0 = arith.constant 0 : i32
    %c0_i32_1 = arith.constant 0 : i32
    return %c0_i32, %c0_i32_0 : i32, i32
  }
  func.func @transform_5(%arg0: i32) -> (i32, i32) {
    %c0_i32 = arith.constant 0 : i32
    %c0_i32_0 = arith.constant 0 : i32
    %c0_i32_1 = arith.constant 0 : i32
    return %c0_i32, %c0_i32_0 : i32, i32
  }
}

</mosaic_0001>

<bundles_post_ra>
// kernel: depthwise_conv_bn_hswish.1
= control target key start
LH: loop header
LB: loop body
LE: loop exit
PB: predicated region body
PF: predicated region fallthrough
CT: control target
= control target key end

     0   :  { %v377_v0 = vmov 2   ;;  %v378_v2 = vmov 0   ;;  %s379_s22 = smov 17   ;;  %v380_v4 = vmov 1   ;;  %v381_v6 = vmov 6   ;;  %s384_s25 = smov 15   ;;  %s549_s1 = inlined_call_operand.vmem [shape: f32[8,9], index: 1, kind: input, shape index: {}]   ;;  %s550_s0 = inlined_call_operand.vmem [shape: f32[8,256], index: 0, kind: input, shape index: {}]   ;;  %s551_s2 = inlined_call_operand.vmem [shape: f32[9,256], index: 2, kind: input, shape index: {}]   ;;  %s552_s3 = inlined_call_operand.vmem [shape: f32[4,1], index: 3, kind: input, shape index: {}]   ;;  %s553_s4 = inlined_call_operand.vmem [shape: f32[4,1], index: 4, kind: input, shape index: {}]   ;;  %s554_s5 = inlined_call_operand.vmem [shape: f32[8,256], index: 5, kind: output, shape index: {}]  }
   0x1   :  { %366 = vset.pattern.permute.xlu1 %v377_v0  ;;  %v45_v1 = vld [vmem:[%s549_s1] sm:$0xff]  ;;  %364 = vset.pattern.permute.xlu0 %v378_v2  ;;  %v436_v5 = vld [vmem:[%s550_s0 + $0x8] sm:$0xff]  ;;  %s382_s1 = smov 16   ;;  %v383_v7 = vmov 3   ;;  %v385_v8 = vmov 4   ;;  %v386_v9 = vmov 5   ;;  %v26_v22 = vlaneseq }
   0x2   :  { %108 = vperm.xlu1 %366, %v45_v1   ;;  %48 = vperm.xlu0 %364, %v45_v1   ;;  %v430_v3 = vld [vmem:[%s550_s0] sm:$0xff]  ;;  %s387_s0 = smov 1   ;;  %s388_s26 = smov 127   ;;  %v389_v10 = vmov 8   ;;  %v391_v11 = vmov 7   ;;  %vm304_vm8 = vcmask 1043456  }
   0x3   :  { %s390_s27 = smov 113   ;;  %s392_s28 = smov 111   ;;  %v34_v24 = vshrl.u32 %v26_v22, 7  ;;  %v459_v26 = vand.u32 127, %v26_v22 }
   0x4   :  { %s393_s29 = smov 112   ;;  %v340_v28 = vld [vmem:[%s551_s2 + $0x1] ss:$8 sm:$0x3] }
   0x5   :  { %v464_v29 = vsub.s32 0, %v34_v24  ;;  %v466_v30 = vsub.s32 1, %v34_v24  ;;  %vm59_vm0 = vcmp.lt.s32.totalorder %v459_v26, 16  ;;  %v31_v31 = vld [vmem:[%s551_s2] ss:$8 sm:$0x3] }
   0x6   :  { %22 = vrot.lane.b32.xlu1 %v430_v3, %s379_s22  ;;  %365 = vset.pattern.permute.xlu0 %v380_v4  ;;  %v341_v32 = vld [vmem:[%s551_s2 + $0x2] ss:$8 sm:$0x3]  ;;  %vm28_vm1 = vcmp.lt.s32.totalorder %v459_v26, 17  ;;  %vm89_vm2 = vcmp.lt.s32.totalorder %v459_v26, 15  ;;  %vm119_vm3 = vcmp.lt.s32.totalorder %v459_v26, 1 }
   0x7   :  { %78 = vperm.xlu0 %365, %v45_v1   ;;  %370 = vset.pattern.permute.xlu1 %v381_v6  ;;  %v68_v33 = vrot.slane %v340_v28, %v464_v29  ;;  %v72_v34 = vrot.slane %v340_v28, %v466_v30  ;;  %v36_v39 = vrot.slane %v31_v31, %v464_v29  ;;  %v342_v42 = vld [vmem:[%s551_s2 + $0x3] ss:$8 sm:$0x3]  ;;  %v343_v62 = vld [vmem:[%s551_s2 + $0x5] ss:$8 sm:$0x3] }
   0x8   :  { %v40_v40 = vrot.slane %v31_v31, %v466_v30  ;;  %v98_v41 = vrot.slane %v341_v32, %v464_v29  ;;  %v102_v45 = vrot.slane %v341_v32, %v466_v30  ;;  %v128_v51 = vrot.slane %v342_v42, %v464_v29  ;;  %v345_v28 = vld [vmem:[%s551_s2 + $0x7] ss:$8 sm:$0x3] }
   0x9   :  { %v132_v52 = vrot.slane %v342_v42, %v466_v30  ;;  %vm157_vm4 = vcmp.lt.s32.totalorder %v459_v26, 127  ;;  %vm187_vm5 = vcmp.lt.s32.totalorder %v459_v26, 113  ;;  %vm217_vm6 = vcmp.lt.s32.totalorder %v459_v26, 112 }
   0xa   :  { %24 = vrot.lane.b32.xlu1 %v436_v5, %s379_s22  ;;  %vm247_vm7 = vcmp.lt.s32.totalorder %v459_v26, 111 }
   0xb   :  { %55 = vrot.lane.b32.xlu0 %v430_v3, %s382_s1 }
   0xc   :  { %367 = vset.pattern.permute.xlu0 %v383_v7 }
   0xe   :  { %57 = vrot.lane.b32.xlu1 %v436_v5, %s382_s1 }
   0xf   :  { %138 = vperm.xlu0 %367, %v45_v1  }
  0x12   :  { %85 = vrot.lane.b32.xlu1 %v430_v3, %s384_s25 }
  0x13   :  { %368 = vset.pattern.permute.xlu0 %v385_v8  ;;  %v166_v8 = vrot.slane %v343_v62, %v464_v29 }
  0x14   :  { %146 = vperm.xlu0 %368, %v45_v1  }
  0x16   :  { %87 = vrot.lane.b32.xlu1 %v436_v5, %s384_s25 }
  0x18   :  { %369 = vset.pattern.permute.xlu0 %v386_v9  ;;  %v344_v9 = vld [vmem:[%s551_s2 + $0x6] ss:$8 sm:$0x3] }
  0x19   :  { %176 = vperm.xlu0 %369, %v45_v1  }
  0x1a   :  { %115 = vrot.lane.b32.xlu1 %v430_v3, %s387_s0 }
  0x1d   :  { %155 = vrot.lane.b32.xlu0 %v436_v5, %s388_s26 }
  0x1e   :  { %117 = vrot.lane.b32.xlu1 %v436_v5, %s387_s0  ;;  %372 = vset.pattern.permute.xlu0 %v389_v10 }
  0x21   :  { %183 = vrot.lane.b32.xlu0 %v430_v3, %s390_s27 }
  0x22   :  { %206 = vperm.xlu1 %370, %v45_v1  }
  0x25   :  { %266 = vperm.xlu0 %372, %v45_v1  }
  0x26   :  { %153 = vrot.lane.b32.xlu1 %v430_v3, %s388_s26 }
  0x27   :  { %371 = vset.pattern.permute.xlu1 %v391_v11 }
  0x29   :  { %243 = vrot.lane.b32.xlu0 %v430_v3, %s392_s28 }
  0x2a   :  { %236 = vperm.xlu1 %371, %v45_v1   ;;  %373 = vset.pattern.permute.xlu0 %v378_v2 }
  0x2e   :  { %185 = vrot.lane.b32.xlu1 %v436_v5, %s390_s27 }
  0x2f   :  { %374 = vset.pattern.permute.xlu1 %v378_v2 }
  0x32   :  { %213 = vrot.lane.b32.xlu1 %v430_v3, %s393_s29 }
  0x36   :  { %215 = vrot.lane.b32.xlu1 %v436_v5, %s393_s29 }
  0x3a   :  { %245 = vrot.lane.b32.xlu1 %v436_v5, %s392_s28 }
  0x81   :  { %v453_v12 = vpop.permute.xlu1 %108  ;;  %v49_v13 = vpop.permute.xlu0 %48 }
  0x85   :  { %v23_v14 = vpop.permute.xlu1 %22 }
  0x86   :  { %v79_v16 = vpop.permute.xlu0 %78 }
  0x89   :  { %v25_v15 = vpop.permute.xlu1 %24 }
  0x8a   :  { %v56_v18 = vpop.permute.xlu0 %55  ;;  %v29_v43 = vsel %vm28_vm1, %v23_v14, %v25_v15  ;;  %v30_v44 = vsel %vm28_vm1, %v25_v15, %v23_v14  ;;  %v170_v15 = vrot.slane %v343_v62, %v466_v30 }
  0x8b   :  { %v43_v53 = vmul.f32 %v36_v39, %v30_v44  ;;  %v44_v54 = vmul.f32 %v40_v40, %v29_v43  ;;  %v346_v40 = vld [vmem:[%s551_s2 + $0x10] ss:$8 sm:$0x3]  ;;  %v226_v43 = vrot.slane %v345_v28, %v464_v29  ;;  %v230_v44 = vrot.slane %v345_v28, %v466_v30  ;;  %v298_v28 = vld [vmem:[%s553_s4] sm:$0xf] }
  0x8d   :  { %v58_v17 = vpop.permute.xlu1 %57  ;;  %v51_v2 = vmul.f32 %v49_v13, %v43_v53  ;;  %v52_v4 = vmul.f32 %v49_v13, %v44_v54 }
  0x8e   :  { %v455_v20 = vpop.permute.xlu0 %138  ;;  %v60_v37 = vsel %vm59_vm0, %v56_v18, %v58_v17  ;;  %v61_v38 = vsel %vm59_vm0, %v58_v17, %v56_v18 }
  0x8f   :  { %v75_v46 = vmul.f32 %v68_v33, %v61_v38  ;;  %v76_v47 = vmul.f32 %v72_v34, %v60_v37 }
  0x91   :  { %v86_v19 = vpop.permute.xlu1 %85  ;;  %v81_v60 = vmul.f32 %v79_v16, %v75_v46  ;;  %v82_v61 = vmul.f32 %v79_v16, %v76_v47 }
  0x93   :  { %v457_v25 = vpop.permute.xlu0 %146  ;;  %v83_v10 = vadd.f32 %v81_v60, %v51_v2  ;;  %v84_v11 = vadd.f32 %v82_v61, %v52_v4 }
  0x94   :  { %v150_v37 = vmul.f32 %v457_v25, %v436_v5  ;;  %v256_v5 = vrot.slane %v346_v40, %v464_v29 }
  0x95   :  { %v88_v21 = vpop.permute.xlu1 %87 }
  0x96   :  { %v90_v48 = vsel %vm89_vm2, %v86_v19, %v88_v21  ;;  %v91_v49 = vsel %vm89_vm2, %v88_v21, %v86_v19  ;;  %v196_v19 = vrot.slane %v344_v9, %v464_v29  ;;  %v200_v21 = vrot.slane %v344_v9, %v466_v30 }
  0x97   :  { %v105_v58 = vmul.f32 %v98_v41, %v91_v49  ;;  %v106_v59 = vmul.f32 %v102_v45, %v90_v48 }
  0x98   :  { %v478_v35 = vpop.permute.xlu0 %176 }
  0x99   :  { %v116_v23 = vpop.permute.xlu1 %115  ;;  %v111_v6 = vmul.f32 %v453_v12, %v105_v58  ;;  %v112_v7 = vmul.f32 %v453_v12, %v106_v59 }
  0x9b   :  { %v113_v22 = vadd.f32 %v111_v6, %v83_v10 }
  0x9c   :  { %v156_v57 = vpop.permute.xlu0 %155 }
  0x9d   :  { %v118_v27 = vpop.permute.xlu1 %117 }
  0x9e   :  { %v120_v55 = vsel %vm119_vm3, %v116_v23, %v118_v27  ;;  %v121_v56 = vsel %vm119_vm3, %v118_v27, %v116_v23  ;;  %v114_v23 = vadd.f32 %v112_v7, %v84_v11 }
  0x9f   :  { %v135_v0 = vmul.f32 %v128_v51, %v121_v56  ;;  %v136_v1 = vmul.f32 %v132_v52, %v120_v55 }
  0xa0   :  { %v184_v14 = vpop.permute.xlu0 %183 }
  0xa1   :  { %v480_v36 = vpop.permute.xlu1 %206  ;;  %v141_v16 = vmul.f32 %v455_v20, %v135_v0  ;;  %v142_v17 = vmul.f32 %v455_v20, %v136_v1  ;;  %v149_v20 = vmul.f32 %v457_v25, %v430_v3  ;;  %v260_v25 = vrot.slane %v346_v40, %v466_v30 }
  0xa3   :  { %v143_v38 = vadd.f32 %v141_v16, %v113_v22  ;;  %v144_v39 = vadd.f32 %v142_v17, %v114_v23  ;;  %v296_v23 = vld [vmem:[%s552_s3] sm:$0xf] }
  0xa4   :  { %v267_v34 = vpop.permute.xlu0 %266 }
  0xa5   :  { %v154_v50 = vpop.permute.xlu1 %153  ;;  %v151_v47 = vadd.f32 %v149_v20, %v143_v38  ;;  %v152_v48 = vadd.f32 %v150_v37, %v144_v39 }
  0xa6   :  { %v158_v18 = vsel %vm157_vm4, %v154_v50, %v156_v57  ;;  %v159_v12 = vsel %vm157_vm4, %v156_v57, %v154_v50 }
  0xa7   :  { %v173_v31 = vmul.f32 %v166_v8, %v158_v18  ;;  %v174_v32 = vmul.f32 %v170_v15, %v159_v12 }
  0xa9   :  { %v237_v63 = vpop.permute.xlu1 %236  ;;  %v179_v45 = vmul.f32 %v478_v35, %v173_v31  ;;  %v180_v3 = vmul.f32 %v478_v35, %v174_v32  ;;  %v244_v35 = vpop.permute.xlu0 %243 }
  0xab   :  { %v181_v55 = vadd.f32 %v179_v45, %v151_v47  ;;  %v182_v56 = vadd.f32 %v180_v3, %v152_v48 }
  0xad   :  { %v186_v13 = vpop.permute.xlu1 %185 }
  0xae   :  { %v188_v24 = vsel %vm187_vm5, %v184_v14, %v186_v13  ;;  %v189_v27 = vsel %vm187_vm5, %v186_v13, %v184_v14 }
  0xaf   :  { %v203_v41 = vmul.f32 %v196_v19, %v188_v24  ;;  %v204_v42 = vmul.f32 %v200_v21, %v189_v27 }
  0xb1   :  { %v214_v33 = vpop.permute.xlu1 %213  ;;  %v209_v51 = vmul.f32 %v480_v36, %v203_v41  ;;  %v210_v52 = vmul.f32 %v480_v36, %v204_v42 }
  0xb3   :  { %v211_v60 = vadd.f32 %v209_v51, %v181_v55  ;;  %v212_v61 = vadd.f32 %v210_v52, %v182_v56 }
  0xb5   :  { %v216_v46 = vpop.permute.xlu1 %215 }
  0xb6   :  { %v218_v49 = vsel %vm217_vm6, %v214_v33, %v216_v46  ;;  %v219_v50 = vsel %vm217_vm6, %v216_v46, %v214_v33 }
  0xb7   :  { %v233_v53 = vmul.f32 %v226_v43, %v218_v49  ;;  %v234_v54 = vmul.f32 %v230_v44, %v219_v50 }
  0xb9   :  { %v239_v29 = vmul.f32 %v237_v63, %v233_v53  ;;  %v240_v57 = vmul.f32 %v237_v63, %v234_v54  ;;  %v246_v30 = vpop.permute.xlu1 %245 }
  0xba   :  { %v248_v58 = vsel %vm247_vm7, %v244_v35, %v246_v30  ;;  %v249_v59 = vsel %vm247_vm7, %v246_v30, %v244_v35 }
  0xbb   :  { %v263_v62 = vmul.f32 %v256_v5, %v248_v58  ;;  %v264_v0 = vmul.f32 %v260_v25, %v249_v59  ;;  %v241_v1 = vadd.f32 %v239_v29, %v211_v60  ;;  %v242_v36 = vadd.f32 %v240_v57, %v212_v61 }
  0xbd   :  { %v269_v2 = vmul.f32 %v267_v34, %v263_v62  ;;  %v270_v4 = vmul.f32 %v267_v34, %v264_v0 }
  0xbf   :  { %v271_v6 = vadd.f32 %v269_v2, %v241_v1  ;;  %v272_v7 = vadd.f32 %v270_v4, %v242_v36 }
  0xc1   :  { %v273_v8 = vadd.f32 %v272_v7, %v271_v6  ;;  %v276_v9 = vmul.f32 %v271_v6, %v271_v6  ;;  %v277_v63 = vmul.f32 %v272_v7, %v272_v7 }
  0xc3   :  { %274 = vadd.xlane.f32.xlu0 %v273_v8  ;;  %v278_v10 = vadd.f32 %v277_v63, %v276_v9 }
  0xc5   :  { %279 = vadd.xlane.f32.xlu1 %v278_v10 }
 0x150   :  { %v275_v11 = vpop.xlane.xlu0 %274 }
 0x151   :  { %v282_v14 = vrot.slane %v275_v11, 4 }
 0x152   :  { %v280_v26 = vpop.xlane.xlu1 %279 }
 0x153   :  { %v284_v15 = vadd.f32 %v282_v14, %v275_v11  ;;  %v286_v13 = vrot.slane %v280_v26, 4 }
 0x155   :  { %v289_v16 = vmul.f32 0.001953125, %v284_v15  ;;  %v288_v17 = vadd.f32 %v286_v13, %v280_v26 }
 0x157   :  { %v291_v18 = vmul.f32 %v289_v16, %v289_v16  ;;  %v290_v12 = vmul.f32 0.001953125, %v288_v17 }
 0x159   :  { %v292_v19 = vsub.f32 %v290_v12, %v291_v18 }
 0x15b   :  { %v293_v21 = vmax.f32 %v292_v19, 0.0 }
 0x15d   :  { %v294_v22 = vadd.f32 1e-05, %v293_v21 }
 0x15f   :  { %375 = vrsqrt.f32 %v294_v22 }
 0x169   :  { %v376_v24 = vpop.eup %375 }
 0x16a   :  { %v297_v27 = vmul.f32 %v376_v24, %v296_v23 }
 0x16c   :  { %v302_v31 = vrot.slane %v297_v27, 4  ;;  %v299_v32 = vmul.f32 %v297_v27, %v289_v16 }
 0x16e   :  { %v305_v33 = vsel %vm304_vm8, %v297_v27, %v302_v31  ;;  %v300_v34 = vsub.f32 %v298_v28, %v299_v32 }
 0x16f   :  { %312 = vperm.xlu0 %373, %v305_v33  }
 0x170   :  { %v307_v20 = vrot.slane %v300_v34, 4 }
 0x172   :  { %v309_v37 = vsel %vm304_vm8, %v300_v34, %v307_v20 }
 0x173   :  { %319 = vperm.xlu1 %374, %v309_v37  }
 0x1ee   :  { %v313_v38 = vpop.permute.xlu0 %312 }
 0x1ef   :  { %v315_v39 = vmul.f32 %v313_v38, %v271_v6  ;;  %v316_v40 = vmul.f32 %v313_v38, %v272_v7 }
 0x1f2   :  { %v320_v41 = vpop.permute.xlu1 %319 }
 0x1f3   :  { %v322_v42 = vadd.f32 %v320_v41, %v315_v39  ;;  %v323_v43 = vadd.f32 %v320_v41, %v316_v40 }
 0x1f5   :  { %v324_v44 = vadd.f32 3.0, %v322_v42  ;;  %v325_v45 = vadd.f32 3.0, %v323_v43 }
 0x1f7   :  { %v326_v3 = vmax.f32 %v324_v44, 0.0  ;;  %v327_v46 = vmax.f32 %v325_v45, 0.0 }
 0x1f9   :  { %v328_v5 = vmin.f32 %v326_v3, 6.0  ;;  %v329_v25 = vmin.f32 %v327_v46, 6.0 }
 0x1fb   :  { %v330_v47 = vmul.f32 %v328_v5, %v322_v42  ;;  %v331_v48 = vmul.f32 %v329_v25, %v323_v43 }
 0x1fd   :  { %v332_v49 = vmul.f32 0.16666667, %v330_v47  ;;  %v333_v50 = vmul.f32 0.16666667, %v331_v48 }
 0x1ff   :  { %334 = vst [vmem:[%s554_s5] sm:$0xff] %v332_v49  ;;  %335 = vst [vmem:[%s554_s5 + $0x8] sm:$0xff] %v333_v50 }

</bundles_post_ra>
